<compile_context>
chip_gen: v6e
topology: v6e:2x2x1
jax: 0.10.0
libtpu: 0.0.40
codegen_flags: <defaults>
</compile_context>

<pallas_src>
import jax
import jax.numpy as jnp
from jax.experimental import pallas as pl
from jax.experimental.pallas import tpu as pltpu


def _round_up(x: int, m: int) -> int:
    return ((x + m - 1) // m) * m


# ----------------------------------------------------------------------------
# Pallas kernel factory
# ----------------------------------------------------------------------------
def _make_supcon_kernel(tile_m: int, m_real: int, num_anchor: int,
                        inv_temp: float, final_scale: float):
    def kernel(lab_a_ref, lab_c_ref, feat_ref, loss_ref):
        step = pl.program_id(0)

        @pl.when(step == 0)
        def _init():
            loss_ref[...] = jnp.zeros_like(loss_ref)

        # Anchor tile is a row-slice of the resident contrast features.
        row0 = pl.multiple_of(step * tile_m, tile_m)
        a = feat_ref[pl.ds(row0, tile_m), :]          # (tile_m, D_pad) bf16
        c = feat_ref[...]                             # (M_pad,  D_pad) bf16

        # anchor @ contrast^T on the MXU: contract dim 1 of both operands
        # (no explicit transpose), bf16 inputs, f32 accumulation.
        adc = jax.lax.dot_general(
            a, c, (((1,), (1,)), ((), ())),
            preferred_element_type=jnp.float32) * jnp.float32(inv_temp)

        m_pad = adc.shape[1]
        row_ids = row0 + jax.lax.broadcasted_iota(jnp.int32, (tile_m, 1), 0)
        col_ids = jax.lax.broadcasted_iota(jnp.int32, (tile_m, m_pad), 1)

        valid_col = col_ids < m_real                  # drop zero-padded columns
        not_self = col_ids != row_ids                 # logits_mask (no self-pairs)
        logits_mask = jnp.logical_and(valid_col, not_self)

        # Row max over the real columns (numerical stability, as in torch).
        logits_max = jnp.max(jnp.where(valid_col, adc, jnp.float32(-1e30)),
                             axis=1, keepdims=True)
        logits = adc - logits_max

        # Single exp pass; diagonal / padding excluded from the denominator.
        exp_logits = jnp.where(logits_mask, jnp.exp(logits), 0.0)
        log_denom = jnp.log(jnp.sum(exp_logits, axis=1, keepdims=True))  # (tile_m,1)

        # Supervised positive mask: same label, not self, not padding.
        pos = jnp.logical_and(lab_a_ref[...] == lab_c_ref[...],
                              logits_mask).astype(jnp.float32)
        n_pos = jnp.sum(pos, axis=1, keepdims=True)
        pairs = jnp.where(n_pos < 1e-6, 1.0, n_pos)

        # sum_j pos*(logits - log_denom) == sum_j pos*logits - n_pos*log_denom
        pos_logit_sum = jnp.sum(pos * logits, axis=1, keepdims=True)
        mean_log_prob_pos = (pos_logit_sum - n_pos * log_denom) / pairs

        # Only real anchor rows contribute (handles padding and 'one' mode).
        anchor_valid = (row_ids < num_anchor).astype(jnp.float32)
        partial = jnp.sum(mean_log_prob_pos * anchor_valid, axis=0, keepdims=True)
        loss_ref[...] += partial

        @pl.when(step == pl.num_programs(0) - 1)
        def _finalize():
            loss_ref[...] = loss_ref[...] * jnp.float32(final_scale)

    return kernel


# ----------------------------------------------------------------------------
# Wrapper (mirrors SupConLoss.forward for the labels / eye-mask paths)
# ----------------------------------------------------------------------------
def supcon_loss(features, labels=None, *, temperature=0.07, contrast_mode="all",
                base_temperature=0.07, tile_m=128):
    """features: [bsz, n_views, ...] (assumed L2-normalized). Returns scalar loss."""
    features = jnp.asarray(features)
    if features.ndim < 3:
        raise ValueError("`features` must be [bsz, n_views, ...]")
    if features.ndim > 3:
        features = features.reshape(features.shape[0], features.shape[1], -1)
    bsz, n_views, dim = features.shape

    if contrast_mode == "all":
        anchor_count = n_views
    elif contrast_mode == "one":
        anchor_count = 1
    else:
        raise ValueError(f"Unknown contrast_mode: {contrast_mode}")

    if labels is None:
        labels = jnp.arange(bsz, dtype=jnp.int32)     # degenerate eye mask
    labels = jnp.asarray(labels, dtype=jnp.int32).reshape(-1)
    if labels.shape[0] != bsz:
        raise ValueError("Num of labels does not match num of features")
    # TODO(synk): the explicit `mask=` argument of SupConLoss.forward (arbitrary
    #             [bsz, bsz] positives) is not wired into the kernel; only the
    #             labels / identity-mask paths are implemented.

    m = n_views * bsz
    num_anchor = anchor_count * bsz

    tile = max(8, _round_up(min(tile_m, num_anchor), 8))   # sublane-aligned tile
    m_pad = _round_up(m, tile)
    anchor_pad = _round_up(num_anchor, tile)
    d_pad = _round_up(dim, 128)                            # lane-dense MXU operand

    # contrast_feature = cat(unbind(features, dim=1), dim=0): row = v*bsz + b
    contrast = jnp.transpose(features, (1, 0, 2)).reshape(m, dim)
    contrast = contrast.astype(jnp.bfloat16)               # bf16 MXU feed
    feat = jnp.zeros((m_pad, d_pad), jnp.bfloat16).at[:m, :dim].set(contrast)

    lab_tiled = jnp.tile(labels, n_views)                   # (m,)
    lab_pad = jnp.zeros((m_pad,), jnp.int32).at[:m].set(lab_tiled)
    lab_col = lab_pad.reshape(m_pad, 1)                     # anchor-side labels
    lab_row = lab_pad.reshape(1, m_pad)                     # contrast-side labels

    n_tiles = anchor_pad // tile
    kernel = _make_supcon_kernel(
        tile_m=tile, m_real=m, num_anchor=num_anchor,
        inv_temp=1.0 / temperature,
        final_scale=-(temperature / base_temperature) / num_anchor)

    loss = pl.pallas_call(
        kernel,
        out_shape=jax.ShapeDtypeStruct((1, 1), jnp.float32),
        grid=(n_tiles,),
        in_specs=[
            pl.BlockSpec((tile, 1), lambda i: (i, 0)),        # anchor labels (tiled)
            pl.BlockSpec((1, m_pad), lambda i: (0, 0)),       # contrast labels (resident)
            pl.BlockSpec((m_pad, d_pad), lambda i: (0, 0)),   # contrast features (resident)
        ],
        out_specs=pl.BlockSpec((1, 1), lambda i: (0, 0)),     # scalar loss accumulator
        compiler_params=pltpu.CompilerParams(
            dimension_semantics=("arbitrary",)),              # reduction axis
    )(lab_col, lab_row, feat)
    return loss[0, 0]


# ----------------------------------------------------------------------------
# Pure-JAX reference (faithful port of the PyTorch forward) for a sanity check
# ----------------------------------------------------------------------------
def supcon_loss_reference(features, labels, *, temperature=0.07,
                          contrast_mode="all", base_temperature=0.07):
    bsz, n_views, dim = features.shape
    contrast = jnp.transpose(features, (1, 0, 2)).reshape(n_views * bsz, dim)
    contrast = contrast.astype(jnp.bfloat16)   # match the kernel's MXU input rounding
    anchor_count = n_views if contrast_mode == "all" else 1
    anchor = contrast if contrast_mode == "all" else contrast[:bsz]
    adc = jnp.dot(anchor, contrast.T, preferred_element_type=jnp.float32) / temperature
    logits = adc - jnp.max(adc, axis=1, keepdims=True)
    m = n_views * bsz
    a_rows = anchor_count * bsz
    rows = jnp.arange(a_rows)[:, None]
    cols = jnp.arange(m)[None, :]
    logits_mask = (cols != rows).astype(jnp.float32)
    lab = jnp.tile(jnp.asarray(labels, jnp.int32), n_views)
    mask = (lab[:a_rows, None] == lab[None, :]).astype(jnp.float32) * logits_mask
    exp_logits = jnp.exp(logits) * logits_mask
    log_prob = logits - jnp.log(jnp.sum(exp_logits, axis=1, keepdims=True))
    n_pos = jnp.sum(mask, axis=1)
    n_pos = jnp.where(n_pos < 1e-6, 1.0, n_pos)
    mean_log_prob_pos = jnp.sum(mask * log_prob, axis=1) / n_pos
    return jnp.mean(-(temperature / base_temperature) * mean_log_prob_pos)


# ----------------------------------------------------------------------------
# Main
# ----------------------------------------------------------------------------
if __name__ == "__main__":
    key = jax.random.PRNGKey(0)
    k_feat, k_lab = jax.random.split(key)

    BSZ, N_VIEWS, FEAT_DIM, N_CLASSES = 8, 2, 32, 4
    feats = jax.random.normal(k_feat, (BSZ, N_VIEWS, FEAT_DIM), jnp.float32)
    feats = feats / jnp.linalg.norm(feats, axis=-1, keepdims=True)   # L2-normalized
    labels = jax.random.randint(k_lab, (BSZ,), 0, N_CLASSES, dtype=jnp.int32)

    # tile_m=8 -> M=16 anchors split over 2 grid steps (exercises the accumulator).
    loss = supcon_loss(feats, labels, tile_m=8)
    ref = supcon_loss_reference(feats, labels)
    jax.block_until_ready((loss, ref))

    if (not bool(jnp.isfinite(loss))) or abs(float(loss) - float(ref)) > 5e-3:
        raise AssertionError(f"mismatch: pallas={float(loss)} ref={float(ref)}")
    print("KERNEL_OK")
</pallas_src>

<mosaic_0001>
module attributes {stable_mosaic.version = 11 : i64} {
  func.func @kernel(%arg0: i32, %arg1: memref<8x1xi32, #tpu.memory_space<vmem>>, %arg2: memref<1x16xi32, #tpu.memory_space<vmem>>, %arg3: memref<16x128xbf16, #tpu.memory_space<vmem>>, %arg4: memref<1x1xf32, #tpu.memory_space<vmem>>) attributes {dimension_semantics = [#tpu.dimension_semantics<arbitrary>], iteration_bounds = array<i64: 2>, scalar_prefetch = 0 : i64, scratch_operands = 0 : i64, tpu.core_type = #tpu.core_type<tc>, window_params = [{transform_indices = @transform_0, window_bounds = array<i64: 8, 1>}, {pipeline_mode = #tpu.pipeline_mode<synchronous>, transform_indices = @transform_1, window_bounds = array<i64: 1, 16>}, {pipeline_mode = #tpu.pipeline_mode<synchronous>, transform_indices = @transform_2, window_bounds = array<i64: 16, 128>}, {pipeline_mode = #tpu.pipeline_mode<synchronous>, transform_indices = @transform_3, window_bounds = array<i64: 1, 1>}]} {
    %c0_i32 = arith.constant 0 : i32
    %0 = arith.cmpi eq, %arg0, %c0_i32 : i32
    %1 = arith.extui %0 : i1 to i32
    %c0_i32_0 = arith.constant 0 : i32
    %2 = arith.cmpi ne, %1, %c0_i32_0 : i32
    scf.if %2 {
      %cst_23 = arith.constant 0.000000e+00 : f32
      %65 = vector.broadcast %cst_23 : f32 to vector<1x1xf32>
      %c0_24 = arith.constant 0 : index
      %c0_25 = arith.constant 0 : index
      %66 = vector.load %arg4[%c0_24, %c0_25] : memref<1x1xf32, #tpu.memory_space<vmem>>, vector<1x1xf32>
      tpu.vector_store %arg4[%c0_24, %c0_25], %65 {strides = array<i32>} : memref<1x1xf32, #tpu.memory_space<vmem>>, vector<1x1xf32>,
    } else {
    }
    %c8_i32 = arith.constant 8 : i32
    %3 = arith.muli %arg0, %c8_i32 : i32
    %4 = tpu.assume_multiple %3, 8 : i32
    %5 = arith.index_cast %4 : i32 to index
    %c0 = arith.constant 0 : index
    %6 = vector.load %arg3[%5, %c0] : memref<16x128xbf16, #tpu.memory_space<vmem>>, vector<8x128xbf16>
    %c0_1 = arith.constant 0 : index
    %c0_2 = arith.constant 0 : index
    %7 = vector.load %arg3[%c0_1, %c0_2] : memref<16x128xbf16, #tpu.memory_space<vmem>>, vector<16x128xbf16>
    %cst = arith.constant dense<0.000000e+00> : vector<8x16xf32>
    %8 = tpu.matmul %6, %7, %cst {dimension_numbers = #tpu.dot_dimension_numbers<[1], [1], [0], [0], [0, 0, 1, 0], [], []>} : vector<8x128xbf16>, vector<16x128xbf16>, vector<8x16xf32> -> vector<8x16xf32>
    %cst_3 = arith.constant 14.2857141 : f32
    %9 = vector.broadcast %cst_3 : f32 to vector<8x16xf32>
    %10 = arith.mulf %8, %9 : vector<8x16xf32>
    %11 = tpu.iota {dimensions = array<i32: 0>} : vector<8x1xi32>
    %12 = vector.broadcast %4 : i32 to vector<8x1xi32>
    %13 = arith.addi %12, %11 : vector<8x1xi32>
    %14 = tpu.iota {dimensions = array<i32: 1>} : vector<8x16xi32>
    %c16_i32 = arith.constant 16 : i32
    %15 = vector.broadcast %c16_i32 : i32 to vector<8x16xi32>
    %16 = arith.cmpi slt, %14, %15 : vector<8x16xi32>
    %17 = vector.broadcast %13 : vector<8x1xi32> to vector<8x16xi32>
    %18 = arith.cmpi ne, %14, %17 : vector<8x16xi32>
    %19 = arith.andi %16, %18 : vector<8x16xi1>
    %cst_4 = arith.constant -1.000000e+30 : f32
    %20 = vector.broadcast %cst_4 : f32 to vector<8x16xf32>
    %21 = arith.select %16, %10, %20 : vector<8x16xi1>, vector<8x16xf32>
    %cst_5 = arith.constant dense<0xFF800000> : vector<8xf32>
    %22 = vector.multi_reduction <maximumf>, %21, %cst_5 [1] : vector<8x16xf32> to vector<8xf32>
    %23 = vector.shape_cast %22 : vector<8xf32> to vector<8x1xf32>
    %24 = vector.broadcast %23 : vector<8x1xf32> to vector<8x16xf32>
    %25 = arith.subf %10, %24 : vector<8x16xf32>
    %26 = math.exp %25 : vector<8x16xf32>
    %cst_6 = arith.constant 0.000000e+00 : f32
    %27 = vector.broadcast %cst_6 : f32 to vector<8x16xf32>
    %28 = arith.select %19, %26, %27 : vector<8x16xi1>, vector<8x16xf32>
    %cst_7 = arith.constant dense<0.000000e+00> : vector<8xf32>
    %29 = vector.multi_reduction <add>, %28, %cst_7 [1] : vector<8x16xf32> to vector<8xf32>
    %30 = vector.shape_cast %29 : vector<8xf32> to vector<8x1xf32>
    %31 = math.log %30 : vector<8x1xf32>
    %c0_8 = arith.constant 0 : index
    %c0_9 = arith.constant 0 : index
    %32 = vector.load %arg1[%c0_8, %c0_9] : memref<8x1xi32, #tpu.memory_space<vmem>>, vector<8x1xi32>
    %c0_10 = arith.constant 0 : index
    %c0_11 = arith.constant 0 : index
    %33 = vector.load %arg2[%c0_10, %c0_11] : memref<1x16xi32, #tpu.memory_space<vmem>>, vector<1x16xi32>
    %34 = vector.broadcast %32 : vector<8x1xi32> to vector<8x16xi32>
    %35 = vector.broadcast %33 : vector<1x16xi32> to vector<8x16xi32>
    %36 = arith.cmpi eq, %34, %35 : vector<8x16xi32>
    %37 = arith.andi %36, %19 : vector<8x16xi1>
    %38 = arith.extui %37 : vector<8x16xi1> to vector<8x16xi32>
    %39 = arith.sitofp %38 : vector<8x16xi32> to vector<8x16xf32>
    %cst_12 = arith.constant dense<0.000000e+00> : vector<8xf32>
    %40 = vector.multi_reduction <add>, %39, %cst_12 [1] : vector<8x16xf32> to vector<8xf32>
    %41 = vector.shape_cast %40 : vector<8xf32> to vector<8x1xf32>
    %cst_13 = arith.constant 9.99999997E-7 : f32
    %42 = vector.broadcast %cst_13 : f32 to vector<8x1xf32>
    %43 = arith.cmpf olt, %41, %42 : vector<8x1xf32>
    %cst_14 = arith.constant 1.000000e+00 : f32
    %44 = vector.broadcast %cst_14 : f32 to vector<8x1xf32>
    %45 = arith.select %43, %44, %41 : vector<8x1xi1>, vector<8x1xf32>
    %46 = arith.mulf %39, %25 : vector<8x16xf32>
    %cst_15 = arith.constant dense<0.000000e+00> : vector<8xf32>
    %47 = vector.multi_reduction <add>, %46, %cst_15 [1] : vector<8x16xf32> to vector<8xf32>
    %48 = vector.shape_cast %47 : vector<8xf32> to vector<8x1xf32>
    %49 = arith.mulf %41, %31 : vector<8x1xf32>
    %50 = arith.subf %48, %49 : vector<8x1xf32>
    %51 = arith.divf %50, %45 : vector<8x1xf32>
    %c16_i32_16 = arith.constant 16 : i32
    %52 = vector.broadcast %c16_i32_16 : i32 to vector<8x1xi32>
    %53 = arith.cmpi slt, %13, %52 : vector<8x1xi32>
    %54 = arith.extui %53 : vector<8x1xi1> to vector<8x1xi32>
    %55 = arith.sitofp %54 : vector<8x1xi32> to vector<8x1xf32>
    %56 = arith.mulf %51, %55 : vector<8x1xf32>
    %cst_17 = arith.constant dense<0.000000e+00> : vector<1xf32>
    %57 = vector.multi_reduction <add>, %56, %cst_17 [0] : vector<8x1xf32> to vector<1xf32>
    %58 = vector.shape_cast %57 : vector<1xf32> to vector<1x1xf32>
    %c0_18 = arith.constant 0 : index
    %c0_19 = arith.constant 0 : index
    %59 = vector.load %arg4[%c0_18, %c0_19] : memref<1x1xf32, #tpu.memory_space<vmem>>, vector<1x1xf32>
    %60 = arith.addf %59, %58 : vector<1x1xf32>
    %c0_20 = arith.constant 0 : index
    %c0_21 = arith.constant 0 : index
    %61 = vector.load %arg4[%c0_20, %c0_21] : memref<1x1xf32, #tpu.memory_space<vmem>>, vector<1x1xf32>
    tpu.vector_store %arg4[%c0_20, %c0_21], %60 {strides = array<i32>} : memref<1x1xf32, #tpu.memory_space<vmem>>, vector<1x1xf32>,
    %c1_i32 = arith.constant 1 : i32
    %62 = arith.cmpi eq, %arg0, %c1_i32 : i32
    %63 = arith.extui %62 : i1 to i32
    %c0_i32_22 = arith.constant 0 : i32
    %64 = arith.cmpi ne, %63, %c0_i32_22 : i32
    scf.if %64 {
      %c0_23 = arith.constant 0 : index
      %c0_24 = arith.constant 0 : index
      %65 = vector.load %arg4[%c0_23, %c0_24] : memref<1x1xf32, #tpu.memory_space<vmem>>, vector<1x1xf32>
      %cst_25 = arith.constant -6.250000e-02 : f32
      %66 = vector.broadcast %cst_25 : f32 to vector<1x1xf32>
      %67 = arith.mulf %65, %66 : vector<1x1xf32>
      %c0_26 = arith.constant 0 : index
      %c0_27 = arith.constant 0 : index
      %68 = vector.load %arg4[%c0_26, %c0_27] : memref<1x1xf32, #tpu.memory_space<vmem>>, vector<1x1xf32>
      tpu.vector_store %arg4[%c0_26, %c0_27], %67 {strides = array<i32>} : memref<1x1xf32, #tpu.memory_space<vmem>>, vector<1x1xf32>,
    } else {
    }
    return
  }
  func.func @transform_0(%arg0: i32) -> (i32, i32) {
    %c0_i32 = arith.constant 0 : i32
    %c0_i32_0 = arith.constant 0 : i32
    return %arg0, %c0_i32 : i32, i32
  }
  func.func @transform_1(%arg0: i32) -> (i32, i32) {
    %c0_i32 = arith.constant 0 : i32
    %c0_i32_0 = arith.constant 0 : i32
    %c0_i32_1 = arith.constant 0 : i32
    return %c0_i32, %c0_i32_0 : i32, i32
  }
  func.func @transform_2(%arg0: i32) -> (i32, i32) {
    %c0_i32 = arith.constant 0 : i32
    %c0_i32_0 = arith.constant 0 : i32
    %c0_i32_1 = arith.constant 0 : i32
    return %c0_i32, %c0_i32_0 : i32, i32
  }
  func.func @transform_3(%arg0: i32) -> (i32, i32) {
    %c0_i32 = arith.constant 0 : i32
    %c0_i32_0 = arith.constant 0 : i32
    %c0_i32_1 = arith.constant 0 : i32
    return %c0_i32, %c0_i32_0 : i32, i32
  }
}

</mosaic_0001>

<bundles_post_ra>
// kernel: tpu_custom_call.1
= control target key start
LH: loop header
LB: loop body
LE: loop exit
PB: predicated region body
PF: predicated region fallthrough
CT: control target
= control target key end

     0   :  { %8 = vsyncpa [#allocation3], 0  ;;  %s447_s12 = smov 0   ;;  %s502_s0 = inlined_call_operand.vmem [shape: s32[16,1], index: 0, kind: input, shape index: {}]   ;;  %s503_s1 = inlined_call_operand.vmem [shape: s32[1,16], index: 1, kind: input, shape index: {}]   ;;  %s504_s2 = inlined_call_operand.vmem [shape: bf16[16,128], index: 2, kind: input, shape index: {}]   ;;  %s505_s3 = inlined_call_operand.hbm [shape: f32[1,1], index: 3, kind: output, shape index: {}]  }
   0x1 LB: > { %s453_s13 = sadd.s32 4294967295, %s420_s12   ;;  %p337_p0 = scmp.ge.s32.totalorder %s420_s12, 1  ;;  %s420_s12 = sphi %s447_s12, %s14_s12  }
   0x2   : > { %p132_p1 = scmp.lt.s32.totalorder %s420_s12, 3 }
   0x4   : > { %p133_p2 = pnand %p337_p0, %p132_p1 }
   0x5   : > { %p150_p3 = scmp.lt.s32.totalorder (!%p133_p2), %s453_s13, 1  ;;  %p339_p4 = scmp.ne.s32.totalorder (!%p133_p2), %s453_s13, 0 }
   0x6   : > { %136 = sbr.rel (%p133_p2) target bundleno = 585 (0x249), region = 32 }
   0xb   : > { %s151_s14 = scalar_select %p150_p3, %s453_s13, 1 }
   0xc   : > { %158 = sbr.rel (%p339_p4) target bundleno = 19 (0x13), region = 36 }
   0xd   : > { %s338_s15 = sshll.u32 %s151_s14, 3 }
   0xe   : > { %s462_s18 = scalar_lea.vmem %s502_s0, %s338_s15 }
  0x11   : > { %vm159_vm0 = vcmask 0   ;;  %v422_v0 = vmov 0.0  }
  0x12   : > { %160 = vst.msk [vmem:[#allocation2] sm:$0x1] %vm159_vm0, %v422_v0 }
  0x13 PF: > { %v379_v1 = vld [vmem:[%s504_s2] sm:$0xff]   ;;  %v423_v2 = vmov 0.0   ;;  %s340_s21 = sshll.u32 %s453_s13, 3  ;;  %vm424_vm1 = vmmov 0   ;;  %v425_v4 = vmov 0   ;;  %v216_v5 = vlaneseq  ;;  %p346_p5 = scmp.ne.s32.totalorder %s453_s13, 1 }
  0x14   : > { %353 = vmatprep.subr.bf16.mxu0 %v423_v2  ;;  %355 = vmatprep.mubr.msk.bf16.mxu0 %vm424_vm1, %v423_v2  ;;  %s162_s22 = sshra.s32 %s340_s21, 3  ;;  %vm226_vm3 = vcmask 130048   ;;  %v239_v14 = vld [vmem:[%s462_s18] sm:$0xff]  ;;  %v218_v19 = vstv %s340_s21  ;;  %vm277_vm10 = vcmask 0  }
  0x15   : > { %354 = vmatpush3.bf16.xpose.msra.mxu0 %v379_v1  ;;  %s341_s23 = sshll.u32 %s162_s22, 2  ;;  %378 = vset.pattern.permute.xlu0 %v425_v4  ;;  %v221_v6 = vand.u32 127, %v216_v5  ;;  %v217_v18 = vshrl.u32 %v216_v5, 7  ;;  %v343_v21 = vld [vmem:[%s503_s1] ss:$0 sm:$0xff] }
  0x16   : > { %s165_s26 = scalar_lea.vmem %s504_s2, %s341_s23 }
  0x17   : > { %v166_v3 = vld [vmem:[%s165_s26] sm:$0xf]  ;;  %vm222_vm2 = vcmp.lt.s32.totalorder %v221_v6, 16  ;;  %v219_v20 = vadd.s32 %v218_v19, %v217_v18 }
  0x19   : > { %vm223_vm4 = vcmp.ne.s32.totalorder %v221_v6, %v219_v20  ;;  %vm265_vm9 = vcmp.lt.s32.totalorder %v219_v20, 16  ;;  %v275_v47 = vld [vmem:[#allocation2] sm:$0x1] }
  0x1a   : > { %vm224_vm5 = vmand %vm222_vm2, %vm223_vm4  ;;  %v345_v39 = vsel %vm265_vm9, 1.0, %v423_v2 }
  0x1c   : > { %356 = vmatmul.mubr.bf16.vlgmr.msra.gmra.mxu0 %v166_v3 }
  0xdc   : > { %v209_v7 = vpop.f32.mrf.mxu0 }
  0xdd   : > { %v215_v8 = vmul.f32 14.285714, %v209_v7 }
  0xde   : > { %v357_v9 = vpop.f32.mrf.mxu0 }
  0xdf   : > { %v225_v10 = vsel %vm222_vm2, %v215_v8, -1e+30 }
  0xe0   : > { %v212_v11 = vpop.f32.mrf.mxu0  ;;  %v227_v12 = vsel %vm226_vm3, %v225_v10, -inf }
  0xe1   : > { %228 = vmax.xlane.f32.xlu0 %v227_v12 }
  0xe2   : > { %v358_v13 = vpop.f32.mrf.mxu0 }
  0xf7   : > { %242 = vperm.xlu0 %378, %v239_v14  }
 0x16a   : > { %v229_v15 = vpop.xlane.xlu0 %228 }
 0x16b   : > { %v230_v16 = vsub.f32 %v215_v8, %v229_v15 }
 0x16d   : > { %v231_v17 = vmul.f32 1.442695, %v230_v16 }
 0x16f   : > { %380 = vpow2.f32 %v231_v17 }
 0x172   : > { %v243_v22 = vpop.permute.xlu0 %242 }
 0x173   : > { %vm248_vm6 = vcmp.eq.s32.totalorder %v243_v22, %v343_v21 }
 0x174   : > { %vm249_vm7 = vmand %vm248_vm6, %vm224_vm5 }
 0x175   : > { %v344_v26 = vsel %vm249_vm7, 1.0, %v423_v2 }
 0x176   : > { %v252_v27 = vsel %vm226_vm3, %v344_v26, 0.0  ;;  %v257_v28 = vmul.f32 %v344_v26, %v230_v16 }
 0x178   : > { %v258_v29 = vsel %vm226_vm3, %v257_v28, 0.0 }
 0x17c   : > { %v381_v23 = vpop.eup %380 }
 0x17d   : > { %v233_v24 = vsel %vm224_vm5, %v381_v23, 0.0 }
 0x17e   : > { %v234_v25 = vsel %vm226_vm3, %v233_v24, 0.0 }
 0x17f   : > { %235 = vadd.xlane.f32.xlu1 %v234_v25 }
 0x183   : > { %253 = vadd.xlane.f32.xlu1 %v252_v27 }
 0x187   : > { %259 = vadd.xlane.f32.xlu1 %v258_v29 }
 0x208   : > { %v236_v30 = vpop.xlane.xlu1 %235 }
 0x209   : > { %382 = vlog2.f32 %v236_v30 }
 0x20c   : > { %v254_v31 = vpop.xlane.xlu1 %253 }
 0x20d   : > { %vm255_vm8 = vcmp.lt.f32.partialorder %v254_v31, 1e-06 }
 0x20e   : > { %v256_v32 = vsel %vm255_vm8, 1.0, %v254_v31 }
 0x20f   : > { %384 = vrcp.f32 %v256_v32 }
 0x210   : > { %v260_v36 = vpop.xlane.xlu1 %259 }
 0x216   : > { %v383_v33 = vpop.eup %382 }
 0x217   : > { %v238_v34 = vmul.f32 0.6931472, %v383_v33 }
 0x219   : > { %v261_v35 = vmul.f32 %v254_v31, %v238_v34 }
 0x21b   : > { %v262_v37 = vsub.f32 %v260_v36, %v261_v35 }
 0x21c   : > { %v385_v38 = vpop.eup %384 }
 0x21d   : > { %v264_v40 = vmul.f32 %v385_v38, %v262_v37 }
 0x21f   : > { %v268_v41 = vmul.f32 %v345_v39, %v264_v40 }
 0x221   : > { %v269_v42 = vrot.slane %v268_v41, 4 }
 0x223   : > { %v270_v43 = vadd.f32 %v269_v42, %v268_v41 }
 0x225   : > { %v271_v44 = vrot.slane %v270_v43, 2 }
 0x227   : > { %v272_v45 = vadd.f32 %v271_v44, %v270_v43 }
 0x229   : > { %v273_v46 = vrot.slane %v272_v45, 1 }
 0x22b   : > { %v274_v48 = vadd.f32 %v273_v46, %v272_v45  ;;  %282 = sbr.rel (%p346_p5) target bundleno = 570 (0x23a), region = 40 }
 0x22d   : > { %v276_v49 = vadd.f32 %v275_v47, %v274_v48 }
 0x22f   : > { %278 = vst.msk [vmem:[#allocation2] sm:$0x1] %vm277_vm10, %v276_v49 }
 0x236   : > { %v283_v50 = vld [vmem:[#allocation2] sm:$0x1] }
 0x237   : > { %v284_v51 = vmul.f32 -0.0625, %v283_v50 }
 0x239   : > { %285 = vst.msk [vmem:[#allocation2] sm:$0x1] %vm277_vm10, %v284_v51 }
 0x23a PF: > { %p363_p6 = scmp.eq.s32.totalorder %s453_s13, 1  ;;  %s426_s29 = smov [#allocation2]  }
 0x23b   : > { %s293_s30 = sshll.u32 %s426_s29, 4  ;;  %s294_s30 = int_to_ptr.vmem [resolvable:$true] %s293_s30 }
 0x23c   : > { %s386_s4 = scalar_lea.vmem %s294_s30, 16  ;;  %s392_s5 = scalar_lea.vmem %s294_s30, 32 }
 0x23d   : > { %p387_p7 = scmp.ne.s32.totalorder %s294_s30, %s386_s4  ;;  %p393_p10 = scmp.lt.s32.totalorder %s294_s30, %s294_s30 }
 0x23e   : > { %p394_p11 = scmp.lt.s32.totalorder %s392_s5, %s386_s4 }
 0x23f   : > { %p388_p8 = pnand %p387_p7, %p363_p6 }
 0x240   : > { %p395_p12 = por %p394_p11, %p393_p10 }
 0x241   : > { %p389_p9 = pneg %p388_p8 }
 0x243   : > { %p396_p13 = pnand %p395_p12, %p389_p9 }
 0x245   : > { %399 = shalt.err (!%p396_p13)
}
 0x246   : > { %360 = dma.vmem_to_hbm [thread:$0]  (%p363_p6), %s294_s30, 16, %s505_s3, [#allocation3]  }
 0x247   : > { %415 = dma.done.wait (%p363_p6), [#allocation3], 16  }
 0x248   : > { %417 = vsyncadd (%p363_p6), [#allocation3], 4294967280 }
 0x249 PF: > { %s14_s12 = sadd.s32 1, %s420_s12  }
 0x24a   : > { %p11_p0 = scmp.ge.s32.totalorder %s14_s12, 4  }
 0x24c   :  { %13 = sbr.rel (!%p11_p0) target bundleno = 1 (0x1), region = 68 }
 0x251   :  { %306 = vsyncpa [#allocation3], 1 }
 0x252   :  { %308 = vsyncpa [#allocation3 + $0x1], 1 }

</bundles_post_ra>
